<compile_context>
chip_gen: v6e
topology: v6e:2x2x1
jax: 0.10.0
libtpu: 0.0.40
codegen_flags: <defaults>
</compile_context>

<pallas_src>
import jax
import jax.numpy as jnp
from jax.experimental import pallas as pl
from jax.experimental.pallas import tpu as pltpu


def _make_l1_partial_kernel(rows, tm, need_mask):
    """Kernel: per-block sum(|x - t|) written as a lane-aligned partial."""

    def kernel(x_ref, t_ref, partial_ref):
        x = x_ref[...].astype(jnp.float32)
        t = t_ref[...].astype(jnp.float32)
        d = jnp.abs(x - t)
        if need_mask:
            # Ragged last block: only `rows - i*tm` rows of this tile are valid
            # HBM data; the rest of the VMEM buffer is garbage -> zero it out.
            i = pl.program_id(0)
            valid = rows - i * tm  # > tm for all non-final blocks (mask no-op)
            row_ids = jax.lax.broadcasted_iota(jnp.int32, d.shape, 0)
            d = jnp.where(row_ids < valid, d, 0.0)
        s = jnp.sum(d)
        # Broadcast the scalar across 128 lanes so the store is lane-aligned.
        partial_ref[...] = jnp.full(partial_ref.shape, s, dtype=jnp.float32)

    return kernel


def content_loss(x, target, *, target_tile_bytes=6 * 1024 * 1024):
    """ContentLoss.forward: returns (input_passthrough, mean |x - target|)."""
    assert x.shape == target.shape, "l1_loss without broadcasting (detached target)"

    total = x.size
    itemsize = jnp.dtype(x.dtype).itemsize

    # Largest lane width (multiple of 128, <= 1024) that divides `total`, so the
    # 2D reshape below is a free view (no HBM copy).
    L = 0
    for cand in range(1024, 0, -128):
        if total % cand == 0:
            L = cand
            break

    if L == 0:
        # Element count not a multiple of 128: a zero-copy lane-dense reshape is
        # impossible, and padding would re-materialize both inputs in HBM.
        # Plain-JAX reduction has the same 2-read traffic profile and is simpler.
        loss = jnp.mean(jnp.abs(x.astype(jnp.float32) - target.astype(jnp.float32)))
        return x, loss

    rows = total // L

    # Tile rows: ~6 MiB per input tile, multiple of 32 (legal sublane count for
    # f32/bf16/int8), or the whole (small) slab in one full-dim block.
    tm_target = max(32, (target_tile_bytes // (L * itemsize) // 32) * 32)
    if rows <= tm_target:
        tm = rows          # single block; full-extent dims are always legal
    else:
        tm = tm_target
    grid = pl.cdiv(rows, tm)
    need_mask = (rows % tm) != 0   # ragged last block -> in-kernel row mask

    x2 = x.reshape(rows, L)        # contiguous reshape: free, no copy
    t2 = target.reshape(rows, L)

    partials = pl.pallas_call(
        _make_l1_partial_kernel(rows, tm, need_mask),
        out_shape=jax.ShapeDtypeStruct((grid, 1, 128), jnp.float32),
        grid_spec=pltpu.PrefetchScalarGridSpec(
            num_scalar_prefetch=0,
            grid=(grid,),
            in_specs=[
                pl.BlockSpec((tm, L), lambda i: (i, 0)),
                pl.BlockSpec((tm, L), lambda i: (i, 0)),
            ],
            out_specs=pl.BlockSpec((1, 1, 128), lambda i: (i, 0, 0)),
        ),
        compiler_params=pltpu.CompilerParams(
            # Independent per-block partials -> safe to shard rows across the
            # two TensorCores on v7x; harmless (single TC) on v5e/v6e.
            dimension_semantics=("parallel",),
            # 2 inputs x 2 buffers x ~6 MiB = ~24 MiB (+tiny output) -> 32 MiB
            # keeps headroom on v7x (64 MiB physical) and raises v5e's 16 MiB
            # scoped default enough for the larger tiles.
            vmem_limit_bytes=32 * 1024 * 1024,
        ),
        cost_estimate=pl.CostEstimate(
            flops=2 * total,
            transcendentals=0,
            bytes_accessed=2 * total * itemsize + grid * 128 * 4,
        ),
    )(x2, t2)

    loss = jnp.sum(partials[:, 0, 0]) * jnp.float32(1.0 / float(total))

    # Identity pass-through: return the original array (no HBM writeback).
    return x, loss


if __name__ == "__main__":
    key = jax.random.PRNGKey(0)
    kx, kt = jax.random.split(key)

    # Small shapes consistent with a conv feature map (NCHW).
    N, C, H, W = 2, 4, 16, 16
    x = jax.random.normal(kx, (N, C, H, W), dtype=jnp.float32)
    target = jax.random.normal(kt, (N, C, H, W), dtype=jnp.float32)  # detached target

    out, loss = content_loss(x, target)
    out = jax.block_until_ready(out)
    loss = jax.block_until_ready(loss)

    ref_loss = jnp.mean(jnp.abs(x - target))
    assert jnp.allclose(out, x), "pass-through output mismatch"
    assert jnp.allclose(loss, ref_loss, rtol=1e-5, atol=1e-6), (loss, ref_loss)

    # Second check: exercise the ragged-tile (masked last block) path without
    # any padding, using a small tile budget to force multiple grid steps.
    kx2, kt2 = jax.random.split(jax.random.PRNGKey(1))
    x2 = jax.random.normal(kx2, (4, 25, 32, 32), dtype=jnp.float32)   # 102400 elems
    t2 = jax.random.normal(kt2, (4, 25, 32, 32), dtype=jnp.float32)   # rows=100, tm=64
    _, loss2 = content_loss(x2, t2, target_tile_bytes=256 * 1024)
    loss2 = jax.block_until_ready(loss2)
    ref_loss2 = jnp.mean(jnp.abs(x2 - t2))
    assert jnp.allclose(loss2, ref_loss2, rtol=1e-5, atol=1e-6), (loss2, ref_loss2)

    print("KERNEL_OK")
</pallas_src>

<mosaic_0001>
module attributes {stable_mosaic.version = 11 : i64} {
  func.func @kernel(%arg0: i32, %arg1: memref<2x1024xf32, #tpu.memory_space<vmem>>, %arg2: memref<2x1024xf32, #tpu.memory_space<vmem>>, %arg3: memref<1x1x128xf32, #tpu.memory_space<vmem>>) attributes {dimension_semantics = [#tpu.dimension_semantics<parallel>], iteration_bounds = array<i64: 1>, scalar_prefetch = 0 : i64, scratch_operands = 0 : i64, tpu.core_type = #tpu.core_type<tc>, window_params = [{transform_indices = @transform_0, window_bounds = array<i64: 2, 1024>}, {transform_indices = @transform_1, window_bounds = array<i64: 2, 1024>}, {transform_indices = @transform_2, window_bounds = array<i64: 1, 1, 128>}]} {
    %c0 = arith.constant 0 : index
    %c0_0 = arith.constant 0 : index
    %0 = vector.load %arg1[%c0, %c0_0] : memref<2x1024xf32, #tpu.memory_space<vmem>>, vector<2x1024xf32>
    %c0_1 = arith.constant 0 : index
    %c0_2 = arith.constant 0 : index
    %1 = vector.load %arg2[%c0_1, %c0_2] : memref<2x1024xf32, #tpu.memory_space<vmem>>, vector<2x1024xf32>
    %2 = arith.subf %0, %1 : vector<2x1024xf32>
    %3 = math.absf %2 : vector<2x1024xf32>
    %4 = vector.shape_cast %3 : vector<2x1024xf32> to vector<1x2x1024xf32>
    %cst = arith.constant dense<0.000000e+00> : vector<1xf32>
    %5 = vector.multi_reduction <add>, %4, %cst [1, 2] : vector<1x2x1024xf32> to vector<1xf32>
    %6 = vector.shape_cast %5 : vector<1xf32> to vector<1x1x1xf32>
    %7 = vector.extract %6[0, 0, 0] : f32 from vector<1x1x1xf32>
    %8 = vector.broadcast %7 : f32 to vector<1x1x128xf32>
    %c0_3 = arith.constant 0 : index
    %c0_4 = arith.constant 0 : index
    %c0_5 = arith.constant 0 : index
    %9 = vector.load %arg3[%c0_3, %c0_4, %c0_5] : memref<1x1x128xf32, #tpu.memory_space<vmem>>, vector<1x1x128xf32>
    tpu.vector_store %arg3[%c0_3, %c0_4, %c0_5], %8 {strides = array<i32>} : memref<1x1x128xf32, #tpu.memory_space<vmem>>, vector<1x1x128xf32>,
    return
  }
  func.func @transform_0(%arg0: i32) -> (i32, i32) {
    %c0_i32 = arith.constant 0 : i32
    %c0_i32_0 = arith.constant 0 : i32
    return %arg0, %c0_i32 : i32, i32
  }
  func.func @transform_1(%arg0: i32) -> (i32, i32) {
    %c0_i32 = arith.constant 0 : i32
    %c0_i32_0 = arith.constant 0 : i32
    return %arg0, %c0_i32 : i32, i32
  }
  func.func @transform_2(%arg0: i32) -> (i32, i32, i32) {
    %c0_i32 = arith.constant 0 : i32
    %c0_i32_0 = arith.constant 0 : i32
    %c0_i32_1 = arith.constant 0 : i32
    return %arg0, %c0_i32, %c0_i32_0 : i32, i32, i32
  }
}

</mosaic_0001>

<bundles_post_ra>
// kernel: tpu_custom_call.1
= control target key start
LH: loop header
LB: loop body
LE: loop exit
PB: predicated region body
PF: predicated region fallthrough
CT: control target
= control target key end

     0   :  { %7 = vsyncpa [#allocation3], 0  ;;  %s239_s0 = inlined_call_operand.hbm [shape: f32[2,1024], index: 0, kind: input, shape index: {}]   ;;  %s240_s1 = inlined_call_operand.hbm [shape: f32[2,1024], index: 1, kind: input, shape index: {}]   ;;  %s241_s2 = inlined_call_operand.hbm [shape: f32[1,1,128], index: 2, kind: output, shape index: {}]  }
   0x1   :  { %8 = vsyncpa [#allocation6], 0 }
   0x2   :  { %9 = vsyncpa [#allocation4], 0  ;;  %s203_s9 = smov [#allocation2]   ;;  %s204_s11 = smov [#allocation5]  }
   0x3   :  { %s16_s10 = sshll.u32 %s203_s9, 4  ;;  %s26_s12 = sshll.u32 %s204_s11, 4  ;;  %s17_s10 = int_to_ptr.vmem [resolvable:$true] %s16_s10  ;;  %s27_s12 = int_to_ptr.vmem [resolvable:$true] %s26_s12 }
   0x4   :  { %s145_s13 = scalar_lea.vmem %s17_s10, 256  ;;  %p150_p1 = scmp.lt.s32.totalorder %s17_s10, %s17_s10 }
   0x5   :  { %p146_p0 = scmp.ne.s32.totalorder %s17_s10, %s145_s13  ;;  %p151_p2 = scmp.lt.s32.totalorder %s145_s13, %s145_s13 }
   0x7   :  { %p152_p3 = por %p151_p2, %p150_p1 }
   0x9   :  { %p153_p4 = pnand %p152_p3, %p146_p0 }
   0xb   :  { %156 = shalt.err (!%p153_p4)
}
   0xc   :  { %19 = dma.hbm_to_vmem [thread:$0]  %s239_s0, 256, %s17_s10, [#allocation3]  }
   0xd   :  { %s165_s16 = scalar_lea.vmem %s27_s12, 256  ;;  %p170_p6 = scmp.lt.s32.totalorder %s27_s12, %s27_s12 }
   0xe   :  { %p166_p5 = scmp.ne.s32.totalorder %s27_s12, %s165_s16  ;;  %p171_p7 = scmp.lt.s32.totalorder %s165_s16, %s165_s16 }
  0x10   :  { %p172_p8 = por %p171_p7, %p170_p6 }
  0x12   :  { %p173_p9 = pnand %p172_p8, %p166_p5 }
  0x14   :  { %176 = shalt.err (!%p173_p9)
}
  0x15   :  { %29 = dma.hbm_to_vmem [thread:$0]  %s240_s1, 256, %s27_s12, [#allocation6]  }
  0x16   :  { %197 = dma.done.wait [#allocation3], 256  }
  0x17   :  { %198 = vsyncadd [#allocation3], 4294967040 }
  0x18   :  { %199 = dma.done.wait [#allocation6], 256  }
  0x19   :  { %200 = vsyncadd [#allocation6], 4294967040  ;;  %v50_v0 = vlaneseq  ;;  %v205_v1 = vmov 1983009808   ;;  %v36_v5 = vld [vmem:[#allocation2] sm:$0xff]  ;;  %v37_v6 = vld [vmem:[#allocation2 + $0x8] sm:$0xff] }
  0x1a   :  { %v48_v2 = vunpack.c.l.s4 %v205_v1  ;;  %v38_v7 = vld [vmem:[#allocation5] sm:$0xff]  ;;  %v39_v8 = vld [vmem:[#allocation5 + $0x8] sm:$0xff]  ;;  %vm88_vm0 = vcmask 1041408   ;;  %s206_s0 = smov [#allocation7]  }
  0x1b   :  { %v51_v4 = vshrl.u32 %v50_v0, 7  ;;  %v40_v9 = vsub.f32 %v36_v5, %v38_v7  ;;  %v41_v11 = vsub.f32 %v37_v6, %v39_v8  ;;  %s121_s1 = sshll.u32 %s206_s0, 4  ;;  %s122_s1 = int_to_ptr.vmem [resolvable:$true] %s121_s1 }
  0x1c   :  { %v49_v3 = vunpack.c.0.s8 %v48_v2  ;;  %s177_s20 = scalar_lea.vmem %s122_s1, 16  ;;  %s181_s21 = scalar_lea.vmem %s122_s1, 32 }
  0x1d   :  { %v42_v12 = vand.u32 2147483647, %v40_v9  ;;  %v43_v13 = vand.u32 2147483647, %v41_v11  ;;  %p178_p10 = scmp.ne.s32.totalorder %s122_s1, %s177_s20  ;;  %p182_p11 = scmp.lt.s32.totalorder %s122_s1, %s122_s1 }
  0x1e   :  { %v52_v10 = vsub.s32 %v49_v3, %v51_v4  ;;  %p183_p12 = scmp.lt.s32.totalorder %s181_s21, %s177_s20 }
  0x1f   :  { %v46_v14 = vcombine.high %v42_v12, %v42_v12  ;;  %v63_v16 = vcombine.high %v43_v13, %v43_v13 }
  0x20   :  { %v53_v15 = vrot.slane %v42_v12, %v52_v10  ;;  %v70_v19 = vrot.slane %v43_v13, %v52_v10  ;;  %p184_p13 = por %p183_p12, %p182_p11 }
  0x21   :  { %v60_v17 = vrot.slane %v46_v14, %v52_v10  ;;  %v77_v25 = vrot.slane %v63_v16, %v52_v10 }
  0x22   :  { %v61_v18 = vcombine.high %v53_v15, %v53_v15  ;;  %v89_v20 = vsel %vm88_vm0, %v53_v15, 0.0  ;;  %v78_v26 = vcombine.high %v70_v19, %v70_v19  ;;  %v96_v29 = vsel %vm88_vm0, %v70_v19, 0.0  ;;  %p185_p0 = pnand %p184_p13, %p178_p10 }
  0x23   :  { %v62_v21 = vcombine.high %v60_v17, %v60_v17  ;;  %v92_v23 = vsel %vm88_vm0, %v60_v17, 0.0  ;;  %v79_v31 = vcombine.high %v77_v25, %v77_v25  ;;  %v100_v34 = vsel %vm88_vm0, %v77_v25, 0.0 }
  0x24   :  { %v90_v22 = vsel %vm88_vm0, %v61_v18, 0.0  ;;  %v98_v32 = vsel %vm88_vm0, %v78_v26, 0.0 }
  0x25   :  { %v91_v24 = vadd.f32 %v90_v22, %v89_v20  ;;  %v94_v27 = vsel %vm88_vm0, %v62_v21, 0.0  ;;  %v102_v36 = vsel %vm88_vm0, %v79_v31, 0.0 }
  0x27   :  { %v93_v28 = vadd.f32 %v92_v23, %v91_v24 }
  0x29   :  { %v95_v30 = vadd.f32 %v94_v27, %v93_v28 }
  0x2b   :  { %v97_v33 = vadd.f32 %v96_v29, %v95_v30 }
  0x2d   :  { %v99_v35 = vadd.f32 %v98_v32, %v97_v33 }
  0x2f   :  { %v101_v37 = vadd.f32 %v100_v34, %v99_v35 }
  0x31   :  { %v103_v38 = vadd.f32 %v102_v36, %v101_v37 }
  0x33   :  { %104 = vadd.xlane.f32.xlu0 %v103_v38 }
  0xbc   :  { %v105_v39 = vpop.xlane.xlu0 %104 }
  0xbd   :  { %v106_v40 = vrot.slane %v105_v39, 4 }
  0xbf   :  { %v107_v41 = vadd.f32 %v106_v40, %v105_v39 }
  0xc1   :  { %v108_v42 = vrot.slane %v107_v41, 2 }
  0xc3   :  { %v109_v43 = vadd.f32 %v108_v42, %v107_v41 }
  0xc5   :  { %v110_v44 = vrot.slane %v109_v43, 1 }
  0xc7   :  { %v111_v45 = vadd.f32 %v110_v44, %v109_v43 }
  0xc9   :  { %131 = vpush %v111_v45 }
  0xfa   :  { %s132_s19 = spop %131 }
  0xfb   :  { %v113_v46 = vstv %s132_s19 }
  0xfc   :  { %114 = vst [vmem:[#allocation7] sm:$0x1] %v113_v46 }
  0xfd   :  { %188 = shalt.err (!%p185_p0)
}
  0xfe   :  { %124 = dma.vmem_to_hbm [thread:$0]  %s122_s1, 16, %s241_s2, [#allocation4]  }
  0xff   :  { %201 = dma.done.wait [#allocation4], 16  }
 0x100   :  { %202 = vsyncadd [#allocation4], 4294967280 }
 0x101   :  { %128 = vsyncpa [#allocation3], 1 }
 0x102   :  { %129 = vsyncpa [#allocation6], 1 }
 0x103   :  { %130 = vsyncpa [#allocation4], 1 }

</bundles_post_ra>
